<compile_context>
chip_gen: v7x
topology: tpu7x:2x2x1
jax: 0.10.0
libtpu: 0.0.40
codegen_flags: <defaults>
</compile_context>

<pallas_src>
import functools
import math

import jax
import jax.numpy as jnp
from jax import lax
from jax.experimental import pallas as pl
from jax.experimental.pallas import tpu as pltpu

_LANE = 128
_MAX_PREFETCH_ROWS = 32768   # SMEM ceiling for the scalar-prefetched index streams


def _round_up(x, m):
    return ((x + m - 1) // m) * m


def _vmem_capacity_bytes():
    try:
        return int(pltpu.get_tpu_info().vmem_capacity_bytes)
    except Exception:
        return 64 * 1024 * 1024   # conservative: v7x per-TensorCore VMEM


def _pick_block_rows(n, chunk, requested):
    """Pick a batch tile that is a multiple of `chunk` and gives >=2 grid tiles
    whenever the (padded) batch allows it (v7x 2-TC sharding; harmless on
    single-TC v5e/v6e)."""
    requested = max(chunk, _round_up(int(requested), chunk))
    n_rounded = _round_up(max(int(n), 1), chunk)
    if n_rounded >= 2 * requested:
        block_rows = requested                     # already >= 2 tiles
    elif n_rounded >= 2 * chunk:
        block_rows = _round_up(n_rounded // 2, chunk)
    else:
        block_rows = chunk
    return min(block_rows, n_rounded)


# ----------------------------------------------------------------------------
# Reference (also the tiny-problem / huge-relation-vocab fallback).
# ----------------------------------------------------------------------------
def transe_forward_reference(entity_emb, relation_emb, pos_triples, neg_triples):
    def score(tr):
        h = jnp.take(entity_emb, tr[:, 0], axis=0)
        r = jnp.take(relation_emb, tr[:, 1], axis=0)
        t = jnp.take(entity_emb, tr[:, 2], axis=0)
        return jnp.sum(jnp.abs(h + r - t), axis=1).astype(jnp.float32)

    return jnp.concatenate([score(pos_triples), score(neg_triples)], axis=0)


# ----------------------------------------------------------------------------
# Path A: both tables VMEM-resident; all gathers are one-hot MXU matmuls.
# ----------------------------------------------------------------------------
def _transe_vmem_kernel(h_idx_ref, r_idx_ref, t_idx_ref, ent_ref, rel_ref, out_ref,
                        *, num_entity, num_relation):
    rows = h_idx_ref.shape[1]

    def gather(idx, table_ref, n):
        onehot = (idx[:, None] ==
                  lax.broadcasted_iota(jnp.int32, (rows, n), 1)).astype(jnp.float32)
        return jnp.dot(onehot, table_ref[...].astype(jnp.float32),
                       preferred_element_type=jnp.float32)

    h = gather(h_idx_ref[0, :], ent_ref, num_entity)
    r = gather(r_idx_ref[0, :], rel_ref, num_relation)
    t = gather(t_idx_ref[0, :], ent_ref, num_entity)
    out_ref[0, :] = jnp.sum(jnp.abs(h + r - t), axis=1)


def _transe_scores_vmem(entity_emb, relation_emb, h_idx, r_idx, t_idx, *, block_rows):
    n = int(h_idx.shape[0])
    E, D = entity_emb.shape
    R = relation_emb.shape[0]

    block_rows = max(_LANE, _round_up(block_rows, _LANE))
    n_pad = _round_up(max(n, 1), block_rows)
    pad = n_pad - n
    # Padded rows use index 0 (valid row); their scores are sliced off below.
    h2 = jnp.pad(h_idx, (0, pad)).reshape(1, n_pad)
    r2 = jnp.pad(r_idx, (0, pad)).reshape(1, n_pad)
    t2 = jnp.pad(t_idx, (0, pad)).reshape(1, n_pad)

    itemsize = jnp.dtype(entity_emb.dtype).itemsize
    needed = ((E + R) * D * itemsize            # tables
              + block_rows * (E + R) * 4        # one-hot operands
              + 4 * block_rows * D * 4)         # gathered / temp tiles
    cap = _vmem_capacity_bytes()
    vmem_limit = int(min(0.9 * cap, max(2 * needed, 32 << 20)))

    kernel = functools.partial(_transe_vmem_kernel,
                               num_entity=int(E), num_relation=int(R))
    out = pl.pallas_call(
        kernel,
        out_shape=jax.ShapeDtypeStruct((1, n_pad), jnp.float32),
        grid_spec=pl.GridSpec(
            grid=(n_pad // block_rows,),
            in_specs=[
                pl.BlockSpec((1, block_rows), lambda i: (0, i)),
                pl.BlockSpec((1, block_rows), lambda i: (0, i)),
                pl.BlockSpec((1, block_rows), lambda i: (0, i)),
                pl.BlockSpec((E, D), lambda i: (0, 0)),   # entity table, VMEM-resident
                pl.BlockSpec((R, D), lambda i: (0, 0)),   # relation table, VMEM-resident
            ],
            out_specs=pl.BlockSpec((1, block_rows), lambda i: (0, i)),
        ),
        compiler_params=pltpu.CompilerParams(
            dimension_semantics=("parallel",),
            vmem_limit_bytes=vmem_limit,
        ),
    )(h2, r2, t2, entity_emb, relation_emb)
    return out[0, :n]


# ----------------------------------------------------------------------------
# Path B: entity table in HBM (per-row DMA gather, chunked double-buffer);
# relation table VMEM-resident (one-hot MXU gather).
# ----------------------------------------------------------------------------
def _transe_hbm_kernel(
    h_idx_ref, t_idx_ref,            # scalar-prefetch (SMEM): (n_pad,) int32 each
    r_idx_ref,                       # VMEM block: (1, block_rows) int32
    rel_ref,                         # VMEM block: (R, D) whole relation table
    ent_ref,                         # HBM ref (memory_space=pl.ANY): (E, D)
    out_ref,                         # VMEM out block: (1, block_rows) f32
    hbuf, tbuf,                      # VMEM scratch: (2, chunk, D) each
    sem,                             # DMA semaphores: (2 streams, 2 slots)
    *, block_rows, chunk, num_relation,
):
    base = pl.program_id(0) * block_rows
    num_chunks = block_rows // chunk

    def issue(c, slot):
        off = base + c * chunk

        def body(row, carry):
            # Padded rows carry index 0 (a valid row); gathering them keeps the
            # aggregate-wait byte count exact and static.
            pltpu.make_async_copy(ent_ref.at[h_idx_ref[off + row]],
                                  hbuf.at[slot, row], sem.at[0, slot]).start()
            pltpu.make_async_copy(ent_ref.at[t_idx_ref[off + row]],
                                  tbuf.at[slot, row], sem.at[1, slot]).start()
            return carry

        lax.fori_loop(0, chunk, body, 0, unroll=8)

    def wait(slot):
        # ONE aggregate wait per stream: the DMA semaphore counts bytes, so a
        # single wait sized to the whole (chunk, D) buffer covers all `chunk`
        # row copies of that stream.  The descriptor is a dummy (never started)
        # built from in-bounds refs of exactly the right total byte size.
        pltpu.make_async_copy(hbuf.at[slot], hbuf.at[slot], sem.at[0, slot]).wait()
        pltpu.make_async_copy(tbuf.at[slot], tbuf.at[slot], sem.at[1, slot]).wait()

    # Prime the pipeline, then gather every relation row for this tile via a
    # one-hot matmul on the idle MXU (overlaps with the first chunk's DMAs).
    issue(0, 0)
    r_idx = r_idx_ref[0, :]
    r_onehot = (r_idx[:, None] ==
                lax.broadcasted_iota(jnp.int32, (block_rows, num_relation), 1)
                ).astype(jnp.float32)
    r_all = jnp.dot(r_onehot, rel_ref[...].astype(jnp.float32),
                    preferred_element_type=jnp.float32)          # (block_rows, D)

    for c in range(num_chunks):                                  # static unroll
        slot = c & 1
        if c + 1 < num_chunks:
            issue(c + 1, 1 - slot)                               # prefetch next chunk
        wait(slot)
        h = hbuf[slot].astype(jnp.float32)
        t = tbuf[slot].astype(jnp.float32)
        r = r_all[c * chunk:(c + 1) * chunk]
        scores = jnp.sum(jnp.abs(h + r - t), axis=1)             # (chunk,)
        out_ref[:, c * chunk:(c + 1) * chunk] = scores[None, :]


def _transe_scores_hbm(entity_emb, relation_emb, h_idx, r_idx, t_idx,
                       *, block_rows, chunk=_LANE):
    n = int(h_idx.shape[0])
    E, D = entity_emb.shape
    R = relation_emb.shape[0]

    block_rows = max(chunk, _round_up(block_rows, chunk))
    n_pad = _round_up(max(n, 1), block_rows)
    pad = n_pad - n
    h1 = jnp.pad(h_idx, (0, pad))
    t1 = jnp.pad(t_idx, (0, pad))
    r2 = jnp.pad(r_idx, (0, pad)).reshape(1, n_pad)

    kernel = functools.partial(_transe_hbm_kernel, block_rows=block_rows,
                               chunk=chunk, num_relation=int(R))
    out = pl.pallas_call(
        kernel,
        out_shape=jax.ShapeDtypeStruct((1, n_pad), jnp.float32),
        grid_spec=pltpu.PrefetchScalarGridSpec(
            num_scalar_prefetch=2,
            grid=(n_pad // block_rows,),
            in_specs=[
                pl.BlockSpec((1, block_rows), lambda i, h, t: (0, i)),   # relation ids
                pl.BlockSpec((R, D), lambda i, h, t: (0, 0)),            # relation table (VMEM)
                pl.BlockSpec(memory_space=pl.ANY),                       # entity table stays in HBM
            ],
            out_specs=pl.BlockSpec((1, block_rows), lambda i, h, t: (0, i)),
            scratch_shapes=[
                pltpu.VMEM((2, chunk, D), entity_emb.dtype),
                pltpu.VMEM((2, chunk, D), entity_emb.dtype),
                pltpu.SemaphoreType.DMA((2, 2)),
            ],
        ),
        compiler_params=pltpu.CompilerParams(
            # Each grid step is fully self-contained (own DMAs, all waited
            # within the step), so the batch axis can shard across v7x's 2 TCs.
            dimension_semantics=("parallel",),
        ),
    )(h1, t1, r2, relation_emb, entity_emb)
    return out[0, :n]


# ----------------------------------------------------------------------------
# Wrapper = TranslationalEmbedding.forward
# ----------------------------------------------------------------------------
def transe_forward(entity_emb, relation_emb, pos_triples, neg_triples,
                   *, block_rows=1024, path=None):
    """Pallas-backed equivalent of TranslationalEmbedding.forward.

    entity_emb:   (num_entity, D)   float32 (or bf16)
    relation_emb: (num_relation, D) float32 (or bf16)
    pos_triples:  (B, 3) int32  [h, r, t]
    neg_triples:  (B, 3) int32  [h, r, t]
    returns:      (2*B,) float32 = concat(pos_score, neg_score)
    path: None (auto) | "vmem" | "hbm" | "xla"
    """
    B = pos_triples.shape[0]
    E, D = entity_emb.shape
    R = relation_emb.shape[0]
    assert relation_emb.shape[1] == D
    N = 2 * B

    triples = jnp.concatenate(
        [pos_triples.astype(jnp.int32), neg_triples.astype(jnp.int32)], axis=0)
    h_idx, r_idx, t_idx = triples[:, 0], triples[:, 1], triples[:, 2]

    itemsize = jnp.dtype(entity_emb.dtype).itemsize
    cap = _vmem_capacity_bytes()

    if path is None:
        if N * D < (1 << 18):
            path = "xla"                     # launch overhead dominates tiny problems
        else:
            br = _pick_block_rows(N, _LANE, min(block_rows, 512))
            vmem_need = ((E + R) * D * itemsize + br * (E + R) * 4 + 4 * br * D * 4)
            if E <= 4096 and vmem_need <= 0.45 * cap:
                path = "vmem"
            elif R * D * itemsize + 512 * R * 4 <= (8 << 20):
                path = "hbm"
            else:
                # TODO(synk): add an HBM-gather variant for huge relation vocabularies.
                path = "xla"

    if path == "xla":
        return transe_forward_reference(entity_emb, relation_emb, pos_triples, neg_triples)

    if path == "vmem":
        br = _pick_block_rows(N, _LANE, min(block_rows, 512))
        return _transe_scores_vmem(entity_emb, relation_emb, h_idx, r_idx, t_idx,
                                   block_rows=br)

    # "hbm" path, sliced so the SMEM scalar-prefetch streams stay within budget.
    outs = []
    for s in range(0, N, _MAX_PREFETCH_ROWS):
        e = min(N, s + _MAX_PREFETCH_ROWS)
        br = _pick_block_rows(e - s, _LANE, block_rows)
        outs.append(_transe_scores_hbm(entity_emb, relation_emb,
                                       h_idx[s:e], r_idx[s:e], t_idx[s:e],
                                       block_rows=br))
    return outs[0] if len(outs) == 1 else jnp.concatenate(outs, axis=0)


if __name__ == "__main__":
    # Small deterministic setup consistent with the module's __init__.
    num_entity = 64
    num_relation = 16
    embedding_dim = 128
    batch = 8

    key = jax.random.PRNGKey(0)
    k_ent, k_rel, k_ph, k_pr, k_pt, k_nh, k_nt = jax.random.split(key, 7)

    bound = 6.0 / math.sqrt(embedding_dim)
    # uniform_(-bound, bound); the F.normalize(...) in __init__ is not assigned
    # back in the PyTorch code, so it is a no-op and is intentionally omitted.
    entity_emb = jax.random.uniform(
        k_ent, (num_entity, embedding_dim), jnp.float32, -bound, bound)
    relation_emb = jax.random.uniform(
        k_rel, (num_relation, embedding_dim), jnp.float32, -bound, bound)

    pos_triples = jnp.stack(
        [
            jax.random.randint(k_ph, (batch,), 0, num_entity),
            jax.random.randint(k_pr, (batch,), 0, num_relation),
            jax.random.randint(k_pt, (batch,), 0, num_entity),
        ],
        axis=1,
    ).astype(jnp.int32)
    neg_triples = jnp.stack(
        [
            jax.random.randint(k_nh, (batch,), 0, num_entity),
            pos_triples[:, 1],  # same relation, corrupted head/tail negatives
            jax.random.randint(k_nt, (batch,), 0, num_entity),
        ],
        axis=1,
    ).astype(jnp.int32)

    ref = transe_forward_reference(entity_emb, relation_emb, pos_triples, neg_triples)

    # Exercise both Pallas paths (VMEM-resident tables + HBM-gather pipeline).
    out_vmem = jax.block_until_ready(
        transe_forward(entity_emb, relation_emb, pos_triples, neg_triples, path="vmem"))
    out_hbm = jax.block_until_ready(
        transe_forward(entity_emb, relation_emb, pos_triples, neg_triples, path="hbm"))

    assert out_vmem.shape == (2 * batch,)
    assert out_hbm.shape == (2 * batch,)
    assert jnp.allclose(out_vmem, ref, atol=1e-3, rtol=1e-4), (
        f"vmem path max abs err {jnp.max(jnp.abs(out_vmem - ref))}")
    assert jnp.allclose(out_hbm, ref, atol=1e-3, rtol=1e-4), (
        f"hbm path max abs err {jnp.max(jnp.abs(out_hbm - ref))}")

    print("KERNEL_OK")
</pallas_src>

<mosaic_0001>
module attributes {stable_mosaic.version = 11 : i64} {
  func.func @_transe_vmem_kernel(%arg0: i32, %arg1: memref<1x128xi32, #tpu.memory_space<vmem>>, %arg2: memref<1x128xi32, #tpu.memory_space<vmem>>, %arg3: memref<1x128xi32, #tpu.memory_space<vmem>>, %arg4: memref<64x128xf32, #tpu.memory_space<vmem>>, %arg5: memref<16x128xf32, #tpu.memory_space<vmem>>, %arg6: memref<1x128xf32, #tpu.memory_space<vmem>>) attributes {dimension_semantics = [#tpu.dimension_semantics<parallel>], iteration_bounds = array<i64: 1>, scalar_prefetch = 0 : i64, scratch_operands = 0 : i64, tpu.core_type = #tpu.core_type<tc>, window_params = [{transform_indices = @transform_0, window_bounds = array<i64: 1, 128>}, {transform_indices = @transform_1, window_bounds = array<i64: 1, 128>}, {transform_indices = @transform_2, window_bounds = array<i64: 1, 128>}, {pipeline_mode = #tpu.pipeline_mode<synchronous>, transform_indices = @transform_3, window_bounds = array<i64: 64, 128>}, {pipeline_mode = #tpu.pipeline_mode<synchronous>, transform_indices = @transform_4, window_bounds = array<i64: 16, 128>}, {transform_indices = @transform_5, window_bounds = array<i64: 1, 128>}]} {
    %c0 = arith.constant 0 : index
    %c0_0 = arith.constant 0 : index
    %0 = vector.load %arg1[%c0, %c0_0] : memref<1x128xi32, #tpu.memory_space<vmem>>, vector<1x128xi32>
    %1 = vector.shape_cast %0 : vector<1x128xi32> to vector<128xi32>
    %2 = vector.shape_cast %1 : vector<128xi32> to vector<128x1xi32>
    %3 = tpu.iota {dimensions = array<i32: 1>} : vector<128x64xi32>
    %4 = vector.broadcast %2 : vector<128x1xi32> to vector<128x64xi32>
    %5 = arith.cmpi eq, %4, %3 : vector<128x64xi32>
    %6 = arith.extui %5 : vector<128x64xi1> to vector<128x64xi32>
    %7 = arith.sitofp %6 : vector<128x64xi32> to vector<128x64xf32>
    %c0_1 = arith.constant 0 : index
    %c0_2 = arith.constant 0 : index
    %8 = vector.load %arg4[%c0_1, %c0_2] : memref<64x128xf32, #tpu.memory_space<vmem>>, vector<64x128xf32>
    %cst = arith.constant dense<0.000000e+00> : vector<128x128xf32>
    %9 = tpu.matmul %7, %8, %cst {dimension_numbers = #tpu.dot_dimension_numbers<[1], [0], [0], [1], [0, 0, 1, 1], [], []>} : vector<128x64xf32>, vector<64x128xf32>, vector<128x128xf32> -> vector<128x128xf32>
    %c0_3 = arith.constant 0 : index
    %c0_4 = arith.constant 0 : index
    %10 = vector.load %arg2[%c0_3, %c0_4] : memref<1x128xi32, #tpu.memory_space<vmem>>, vector<1x128xi32>
    %11 = vector.shape_cast %10 : vector<1x128xi32> to vector<128xi32>
    %12 = vector.shape_cast %11 : vector<128xi32> to vector<128x1xi32>
    %13 = tpu.iota {dimensions = array<i32: 1>} : vector<128x16xi32>
    %14 = vector.broadcast %12 : vector<128x1xi32> to vector<128x16xi32>
    %15 = arith.cmpi eq, %14, %13 : vector<128x16xi32>
    %16 = arith.extui %15 : vector<128x16xi1> to vector<128x16xi32>
    %17 = arith.sitofp %16 : vector<128x16xi32> to vector<128x16xf32>
    %c0_5 = arith.constant 0 : index
    %c0_6 = arith.constant 0 : index
    %18 = vector.load %arg5[%c0_5, %c0_6] : memref<16x128xf32, #tpu.memory_space<vmem>>, vector<16x128xf32>
    %cst_7 = arith.constant dense<0.000000e+00> : vector<128x128xf32>
    %19 = tpu.matmul %17, %18, %cst_7 {dimension_numbers = #tpu.dot_dimension_numbers<[1], [0], [0], [1], [0, 0, 1, 1], [], []>} : vector<128x16xf32>, vector<16x128xf32>, vector<128x128xf32> -> vector<128x128xf32>
    %c0_8 = arith.constant 0 : index
    %c0_9 = arith.constant 0 : index
    %20 = vector.load %arg3[%c0_8, %c0_9] : memref<1x128xi32, #tpu.memory_space<vmem>>, vector<1x128xi32>
    %21 = vector.shape_cast %20 : vector<1x128xi32> to vector<128xi32>
    %22 = vector.shape_cast %21 : vector<128xi32> to vector<128x1xi32>
    %23 = tpu.iota {dimensions = array<i32: 1>} : vector<128x64xi32>
    %24 = vector.broadcast %22 : vector<128x1xi32> to vector<128x64xi32>
    %25 = arith.cmpi eq, %24, %23 : vector<128x64xi32>
    %26 = arith.extui %25 : vector<128x64xi1> to vector<128x64xi32>
    %27 = arith.sitofp %26 : vector<128x64xi32> to vector<128x64xf32>
    %c0_10 = arith.constant 0 : index
    %c0_11 = arith.constant 0 : index
    %28 = vector.load %arg4[%c0_10, %c0_11] : memref<64x128xf32, #tpu.memory_space<vmem>>, vector<64x128xf32>
    %cst_12 = arith.constant dense<0.000000e+00> : vector<128x128xf32>
    %29 = tpu.matmul %27, %28, %cst_12 {dimension_numbers = #tpu.dot_dimension_numbers<[1], [0], [0], [1], [0, 0, 1, 1], [], []>} : vector<128x64xf32>, vector<64x128xf32>, vector<128x128xf32> -> vector<128x128xf32>
    %30 = arith.addf %9, %19 : vector<128x128xf32>
    %31 = arith.subf %30, %29 : vector<128x128xf32>
    %32 = math.absf %31 : vector<128x128xf32>
    %cst_13 = arith.constant dense<0.000000e+00> : vector<128xf32>
    %33 = vector.multi_reduction <add>, %32, %cst_13 [1] : vector<128x128xf32> to vector<128xf32>
    %c0_14 = arith.constant 0 : index
    %c0_15 = arith.constant 0 : index
    %34 = vector.load %arg6[%c0_14, %c0_15] : memref<1x128xf32, #tpu.memory_space<vmem>>, vector<1x128xf32>
    %35 = vector.shape_cast %34 : vector<1x128xf32> to vector<128xf32>
    %36 = vector.shape_cast %33 : vector<128xf32> to vector<1x128xf32>
    tpu.vector_store %arg6[%c0_14, %c0_15], %36 {strides = array<i32>} : memref<1x128xf32, #tpu.memory_space<vmem>>, vector<1x128xf32>,
    return
  }
  func.func @transform_0(%arg0: i32) -> (i32, i32) {
    %c0_i32 = arith.constant 0 : i32
    %c0_i32_0 = arith.constant 0 : i32
    return %c0_i32, %arg0 : i32, i32
  }
  func.func @transform_1(%arg0: i32) -> (i32, i32) {
    %c0_i32 = arith.constant 0 : i32
    %c0_i32_0 = arith.constant 0 : i32
    return %c0_i32, %arg0 : i32, i32
  }
  func.func @transform_2(%arg0: i32) -> (i32, i32) {
    %c0_i32 = arith.constant 0 : i32
    %c0_i32_0 = arith.constant 0 : i32
    return %c0_i32, %arg0 : i32, i32
  }
  func.func @transform_3(%arg0: i32) -> (i32, i32) {
    %c0_i32 = arith.constant 0 : i32
    %c0_i32_0 = arith.constant 0 : i32
    %c0_i32_1 = arith.constant 0 : i32
    return %c0_i32, %c0_i32_0 : i32, i32
  }
  func.func @transform_4(%arg0: i32) -> (i32, i32) {
    %c0_i32 = arith.constant 0 : i32
    %c0_i32_0 = arith.constant 0 : i32
    %c0_i32_1 = arith.constant 0 : i32
    return %c0_i32, %c0_i32_0 : i32, i32
  }
  func.func @transform_5(%arg0: i32) -> (i32, i32) {
    %c0_i32 = arith.constant 0 : i32
    %c0_i32_0 = arith.constant 0 : i32
    return %c0_i32, %arg0 : i32, i32
  }
}

</mosaic_0001>

<bundles_post_ra>
// kernel: tpu_custom_call.1
= control target key start
LH: loop header
LB: loop body
LE: loop exit
PB: predicated region body
PF: predicated region fallthrough
CT: control target
= control target key end

     0   :  { %10 = vsyncpa [#allocation3], 0  ;;  %s1933_s0 = inlined_call_operand.hbm [shape: s32[1,128], index: 0, kind: input, shape index: {}]   ;;  %s1934_s1 = inlined_call_operand.vmem [shape: s32[1,128], index: 1, kind: input, shape index: {}]   ;;  %s1935_s2 = inlined_call_operand.vmem [shape: s32[1,128], index: 2, kind: input, shape index: {}]   ;;  %s1936_s3 = inlined_call_operand.hbm [shape: f32[64,128], index: 3, kind: input, shape index: {}]   ;;  %s1937_s4 = inlined_call_operand.hbm [shape: f32[16,128], index: 4, kind: input, shape index: {}]   ;;  %s1938_s5 = inlined_call_operand.hbm [shape: f32[1,128], index: 5, kind: output, shape index: {}]  }
   0x1   :  { %11 = vsyncpa [#allocation6], 0 }
   0x2   :  { %12 = vsyncpa [#allocation4], 0  ;;  %s1636_s18 = smov [#allocation5]   ;;  %s1542_s22 = scalar_lea.hbm %s1936_s3, 1024 }
   0x3   :  { %s32_s19 = sshll.u32 %s1636_s18, 4  ;;  %p1543_p0 = scmp.ne.s32.totalorder %s1936_s3, %s1542_s22  ;;  %s33_s19 = int_to_ptr.vmem [resolvable:$true] %s32_s19 }
   0x4   :  { %p1546_p1 = scmp.lt.u32.totalorder %s1542_s22, %s1936_s3 }
   0x6   :  { %p1548_p2 = pnand %p1546_p1, %p1543_p0 }
   0x8   :  { %1551 = shalt.err (!%p1548_p2)
}
   0x9   :  { %s1552_s27 = scalar_lea.vmem %s33_s19, 1024  ;;  %p1557_p4 = scmp.lt.s32.totalorder %s33_s19, %s33_s19 }
   0xa   :  { %p1553_p3 = scmp.ne.s32.totalorder %s33_s19, %s1552_s27  ;;  %p1558_p5 = scmp.lt.s32.totalorder %s1552_s27, %s1552_s27 }
   0xc   :  { %p1559_p6 = por %p1558_p5, %p1557_p4 }
   0xe   :  { %p1560_p7 = pnand %p1559_p6, %p1553_p3 }
  0x10   :  { %1563 = shalt.err (!%p1560_p7)
}
  0x11   :  { %s1637_s28 = smov 128   ;;  %s1638_s29 = smov 8  }
  0x12   :  { %38 = dma.hbm_to_vmem [thread:$0]  %s1936_s3, 1024, %s33_s19, [#allocation6], %s1637_s28, %s1637_s28, %s1638_s29  }
  0x13   :  { %s1639_s7 = smov [#allocation2]   ;;  %s1640_s9 = smov [#allocation7]  }
  0x14   :  { %s19_s8 = sshll.u32 %s1639_s7, 4  ;;  %s44_s10 = sshll.u32 %s1640_s9, 4  ;;  %s20_s8 = int_to_ptr.vmem [resolvable:$true] %s19_s8  ;;  %s45_s10 = int_to_ptr.vmem [resolvable:$true] %s44_s10 }
  0x15   :  { %s1564_s13 = scalar_lea.hbm %s1933_s0, 16 }
  0x16   :  { %p1565_p8 = scmp.ne.s32.totalorder %s1933_s0, %s1564_s13  ;;  %p1568_p9 = scmp.lt.u32.totalorder %s1564_s13, %s1933_s0 }
  0x18   :  { %p1570_p10 = pnand %p1568_p9, %p1565_p8 }
  0x1a   :  { %1573 = shalt.err (!%p1570_p10)
}
  0x1b   :  { %s1574_s3 = scalar_lea.vmem %s20_s8, 16  ;;  %s1578_s18 = scalar_lea.vmem %s20_s8, 32 }
  0x1c   :  { %p1575_p11 = scmp.ne.s32.totalorder %s20_s8, %s1574_s3  ;;  %p1579_p12 = scmp.lt.s32.totalorder %s20_s8, %s20_s8 }
  0x1d   :  { %p1580_p13 = scmp.lt.s32.totalorder %s1578_s18, %s1574_s3 }
  0x1f   :  { %p1581_p0 = por %p1580_p13, %p1579_p12 }
  0x21   :  { %p1582_p1 = pnand %p1581_p0, %p1575_p11 }
  0x23   :  { %1585 = shalt.err (!%p1582_p1)
}
  0x24   :  { %22 = dma.hbm_to_vmem [thread:$0]  %s1933_s0, 16, %s20_s8, [#allocation3]  }
  0x25   :  { %s1586_s23 = scalar_lea.hbm %s1937_s4, 256 }
  0x26   :  { %p1587_p2 = scmp.ne.s32.totalorder %s1937_s4, %s1586_s23  ;;  %p1590_p3 = scmp.lt.u32.totalorder %s1586_s23, %s1937_s4 }
  0x28   :  { %p1592_p4 = pnand %p1590_p3, %p1587_p2 }
  0x2a   :  { %1595 = shalt.err (!%p1592_p4)
}
  0x2b   :  { %s1596_s30 = scalar_lea.vmem %s45_s10, 256  ;;  %p1601_p6 = scmp.lt.s32.totalorder %s45_s10, %s45_s10 }
  0x2c   :  { %p1597_p5 = scmp.ne.s32.totalorder %s45_s10, %s1596_s30  ;;  %p1602_p7 = scmp.lt.s32.totalorder %s1596_s30, %s1596_s30 }
  0x2e   :  { %p1603_p8 = por %p1602_p7, %p1601_p6 }
  0x30   :  { %p1604_p9 = pnand %p1603_p8, %p1597_p5 }
  0x32   :  { %1607 = shalt.err (!%p1604_p9)
}
  0x33   :  { %50 = dma.hbm_to_vmem [thread:$0]  %s1937_s4, 256, %s45_s10, [#allocation6], %s1637_s28, %s1637_s28, %s1638_s29  }
  0x34   :  { %1630 = dma.done.wait [#allocation3], 16  }
  0x35   :  { %1631 = vsyncadd [#allocation3], 4294967280 }
  0x36   :  { %1632 = dma.done.wait [#allocation6], 1280  }
  0x37   :  { %1633 = vsyncadd [#allocation6], 4294966016  ;;  %v1225_v0 = vld [vmem:[%s1934_s1] ss:$0 sm:$0xff]  ;;  %v302_v1 = vld [vmem:[#allocation7] sm:$0xff]  ;;  %v128_v9 = vlaneseq  ;;  %vm304_vm0 = vcmask 130048  }
  0x38   :  { %224 = vbcast.lane.b32.xlu1 %v1225_v0, 320  ;;  %192 = vbcast.lane.b32.xlu0 %v1225_v0, 256  ;;  %v303_v2 = vld [vmem:[#allocation7 + $0x8] sm:$0xff]  ;;  %v178_v4 = vld [vmem:[#allocation5] sm:$0xff]  ;;  %v1208_v7 = vld [vmem:[#allocation2] ss:$0 sm:$0xff] }
  0x39   :  { %v1481_v3 = vpack.c.bf16 %v303_v2, %v302_v1  ;;  %v179_v5 = vld [vmem:[#allocation5 + $0x8] sm:$0xff]  ;;  %v1258_v8 = vld [vmem:[%s1935_s2] ss:$0 sm:$0xff]  ;;  %v1726_v10 = vand.u32 127, %v128_v9  ;;  %v1641_v13 = vmov 0.0   ;;  %v180_v16 = vld [vmem:[#allocation5 + $0x10] sm:$0xff] }
  0x3a   :  { %v1718_v6 = vpack.c.bf16 %v179_v5, %v178_v4  ;;  %v181_v17 = vld [vmem:[#allocation5 + $0x18] sm:$0xff]  ;;  %v182_v23 = vld [vmem:[#allocation5 + $0x20] sm:$0xff]  ;;  %v183_v24 = vld [vmem:[#allocation5 + $0x28] sm:$0xff]  ;;  %s1642_s2 = smov [#allocation8]  }
  0x3b   :  { %1482 = vmatprep.subr.bf16.mxu0 %v1481_v3  ;;  %1517 = vmatprep.subr.bf16.mxu1 %v1481_v3  ;;  %v1489_v20 = vpack.c.bf16 %v181_v17, %v180_v16  ;;  %v1493_v29 = vpack.c.bf16 %v183_v24, %v182_v23  ;;  %v184_v30 = vld [vmem:[#allocation5 + $0x30] sm:$0xff]  ;;  %v185_v31 = vld [vmem:[#allocation5 + $0x38] sm:$0xff]  ;;  %s1198_s28 = sshll.u32 %s1642_s2, 4  ;;  %s1199_s28 = int_to_ptr.vmem [resolvable:$true] %s1198_s28 }
  0x3c   :  { %228 = vbcast.lane.b32.xlu1 %v1225_v0, 328  ;;  %196 = vbcast.lane.b32.xlu0 %v1225_v0, 264  ;;  %v1497_v36 = vpack.c.bf16 %v185_v31, %v184_v30  ;;  %s1608_s29 = scalar_lea.vmem %s1199_s28, 16  ;;  %s1612_s9 = scalar_lea.vmem %s1199_s28, 32 }
  0x3d   :  { %1484 = vmatpush3.bf16.msra.mxu0 %v1481_v3  ;;  %1518 = vmatpush3.bf16.msra.mxu1 %v1481_v3  ;;  %p1609_p10 = scmp.ne.s32.totalorder %s1199_s28, %s1608_s29  ;;  %p1613_p11 = scmp.lt.s32.totalorder %s1199_s28, %s1199_s28 }
  0x3e   :  { %1502 = vmatprep.subr.bf16.mxu0 %v1718_v6  ;;  %1486 = vmatprep.subr.bf16.mxu1 %v1718_v6  ;;  %p1614_p12 = scmp.lt.s32.totalorder %s1612_s9, %s1608_s29 }
  0x40   :  { %200 = vbcast.lane.b32.xlu0 %v1225_v0, 272  ;;  %204 = vbcast.lane.b32.xlu1 %v1225_v0, 280  ;;  %p1615_p13 = por %p1614_p12, %p1613_p11 }
  0x42   :  { %p1616_p0 = pnand %p1615_p13, %p1609_p10 }
  0x44   :  { %232 = vbcast.lane.b32.xlu0 %v1225_v0, 336  ;;  %236 = vbcast.lane.b32.xlu1 %v1225_v0, 344 }
  0x48   :  { %208 = vbcast.lane.b32.xlu0 %v1225_v0, 288  ;;  %212 = vbcast.lane.b32.xlu1 %v1225_v0, 296 }
  0x4c   :  { %240 = vbcast.lane.b32.xlu0 %v1225_v0, 352  ;;  %244 = vbcast.lane.b32.xlu1 %v1225_v0, 360 }
  0x50   :  { %216 = vbcast.lane.b32.xlu0 %v1225_v0, 304  ;;  %220 = vbcast.lane.b32.xlu1 %v1225_v0, 312 }
  0x54   :  { %248 = vbcast.lane.b32.xlu0 %v1225_v0, 368  ;;  %252 = vbcast.lane.b32.xlu1 %v1225_v0, 376 }
  0x58   :  { %66 = vbcast.lane.b32.xlu0 %v1208_v7, 256  ;;  %70 = vbcast.lane.b32.xlu1 %v1208_v7, 264 }
  0x5c   :  { %504 = vbcast.lane.b32.xlu0 %v1258_v8, 256  ;;  %508 = vbcast.lane.b32.xlu1 %v1258_v8, 264 }
  0x60   :  { %74 = vbcast.lane.b32.xlu0 %v1208_v7, 272  ;;  %78 = vbcast.lane.b32.xlu1 %v1208_v7, 280 }
  0x64   :  { %512 = vbcast.lane.b32.xlu0 %v1258_v8, 272  ;;  %516 = vbcast.lane.b32.xlu1 %v1258_v8, 280 }
  0x68   :  { %82 = vbcast.lane.b32.xlu0 %v1208_v7, 288  ;;  %86 = vbcast.lane.b32.xlu1 %v1208_v7, 296 }
  0x6c   :  { %520 = vbcast.lane.b32.xlu0 %v1258_v8, 288  ;;  %524 = vbcast.lane.b32.xlu1 %v1258_v8, 296 }
  0x70   :  { %90 = vbcast.lane.b32.xlu0 %v1208_v7, 304  ;;  %94 = vbcast.lane.b32.xlu1 %v1208_v7, 312 }
  0x74   :  { %528 = vbcast.lane.b32.xlu0 %v1258_v8, 304  ;;  %532 = vbcast.lane.b32.xlu1 %v1258_v8, 312 }
  0x78   :  { %98 = vbcast.lane.b32.xlu0 %v1208_v7, 320  ;;  %102 = vbcast.lane.b32.xlu1 %v1208_v7, 328 }
  0x7c   :  { %536 = vbcast.lane.b32.xlu0 %v1258_v8, 320  ;;  %540 = vbcast.lane.b32.xlu1 %v1258_v8, 328 }
  0x80   :  { %106 = vbcast.lane.b32.xlu0 %v1208_v7, 336  ;;  %110 = vbcast.lane.b32.xlu1 %v1208_v7, 344 }
  0x84   :  { %544 = vbcast.lane.b32.xlu0 %v1258_v8, 336  ;;  %548 = vbcast.lane.b32.xlu1 %v1258_v8, 344 }
  0x88   :  { %114 = vbcast.lane.b32.xlu0 %v1208_v7, 352  ;;  %118 = vbcast.lane.b32.xlu1 %v1208_v7, 360 }
  0x8c   :  { %552 = vbcast.lane.b32.xlu0 %v1258_v8, 352  ;;  %556 = vbcast.lane.b32.xlu1 %v1258_v8, 360 }
  0x90   :  { %122 = vbcast.lane.b32.xlu0 %v1208_v7, 368  ;;  %126 = vbcast.lane.b32.xlu1 %v1208_v7, 376 }
  0x94   :  { %560 = vbcast.lane.b32.xlu0 %v1258_v8, 368  ;;  %564 = vbcast.lane.b32.xlu1 %v1258_v8, 376 }
  0xaa   :  { %v225_v11 = vpop.permute.xlu1 %224  ;;  %v193_v12 = vpop.permute.xlu0 %192 }
  0xab   :  { %vm262_vm1 = vcmp.eq.s32.totalorder %v225_v11, %v1726_v10  ;;  %vm254_vm2 = vcmp.eq.s32.totalorder %v193_v12, %v1726_v10 }
  0xac   :  { %v1226_v14 = vsel %vm254_vm2, 1.0, %v1641_v13  ;;  %v1234_v15 = vsel %vm262_vm1, 1.0, %v1641_v13  ;;  %vm614_vm2 = vcmask 523264  }
  0xad   :  { %1377 = vmatprep.mubr.msk.f32.mxu0 %vm304_vm0, %v1226_v14  ;;  %1389 = vmatprep.mubr.msk.f32.mxu1 %vm304_vm0, %v1234_v15 }
  0xae   :  { %v229_v18 = vpop.permute.xlu1 %228  ;;  %v197_v19 = vpop.permute.xlu0 %196 }
  0xaf   :  { %vm263_vm3 = vcmp.eq.s32.totalorder %v229_v18, %v1726_v10  ;;  %vm255_vm4 = vcmp.eq.s32.totalorder %v197_v19, %v1726_v10 }
  0xb0   :  { %v1235_v21 = vsel %vm263_vm3, 1.0, %v1641_v13  ;;  %v1227_v22 = vsel %vm255_vm4, 1.0, %v1641_v13 }
  0xb1   :  { %1378 = vmatmul.mubr.msk.f32.vlgmr.msra.gmra.mrb[0].mxu0 %vm304_vm0, %v1227_v22  ;;  %1390 = vmatmul.mubr.msk.f32.vlgmr.msra.gmra.mrb[0].mxu1 %vm304_vm0, %v1235_v21 }
  0xb2   :  { %v201_v25 = vpop.permute.xlu0 %200  ;;  %v205_v26 = vpop.permute.xlu1 %204  ;;  %1504 = vmatpush3.bf16.msra.mxu0 %v1718_v6  ;;  %1488 = vmatpush3.bf16.msra.mxu1 %v1718_v6 }
  0xb3   :  { %vm256_vm5 = vcmp.eq.s32.totalorder %v201_v25, %v1726_v10  ;;  %vm257_vm6 = vcmp.eq.s32.totalorder %v205_v26, %v1726_v10  ;;  %1506 = vmatprep.subr.bf16.mxu0 %v1489_v20  ;;  %1490 = vmatprep.subr.bf16.mxu1 %v1489_v20 }
  0xb4   :  { %v1228_v27 = vsel %vm256_vm5, 1.0, %v1641_v13  ;;  %v1229_v28 = vsel %vm257_vm6, 1.0, %v1641_v13 }
  0xb5   :  { %1380 = vmatprep.mubr.msk.f32.mxu0 %vm304_vm0, %v1228_v27 }
  0xb6   :  { %1381 = vmatmul.mubr.msk.f32.gmra.mrb[2].mxu0 %vm304_vm0, %v1229_v28  ;;  %v233_v32 = vpop.permute.xlu0 %232  ;;  %v237_v33 = vpop.permute.xlu1 %236  ;;  %1492 = vmatpush3.bf16.msra.mxu1 %v1489_v20 }
  0xb7   :  { %vm264_vm7 = vcmp.eq.s32.totalorder %v233_v32, %v1726_v10  ;;  %vm265_vm8 = vcmp.eq.s32.totalorder %v237_v33, %v1726_v10  ;;  %1508 = vmatpush3.bf16.msra.mxu0 %v1489_v20  ;;  %1494 = vmatprep.subr.bf16.mxu1 %v1493_v29 }
  0xb8   :  { %v1236_v34 = vsel %vm264_vm7, 1.0, %v1641_v13  ;;  %v1237_v35 = vsel %vm265_vm8, 1.0, %v1641_v13  ;;  %1510 = vmatprep.subr.bf16.mxu0 %v1493_v29 }
  0xb9   :  { %1392 = vmatprep.mubr.msk.f32.mxu1 %vm304_vm0, %v1236_v34 }
  0xba   :  { %1393 = vmatmul.mubr.msk.f32.gmra.mrb[2].mxu1 %vm304_vm0, %v1237_v35  ;;  %v209_v37 = vpop.permute.xlu0 %208  ;;  %v213_v38 = vpop.permute.xlu1 %212 }
  0xbb   :  { %vm258_vm9 = vcmp.eq.s32.totalorder %v209_v37, %v1726_v10  ;;  %vm259_vm10 = vcmp.eq.s32.totalorder %v213_v38, %v1726_v10  ;;  %1512 = vmatpush3.bf16.msra.mxu0 %v1493_v29  ;;  %1496 = vmatpush3.bf16.msra.mxu1 %v1493_v29 }
  0xbc   :  { %v1230_v39 = vsel %vm258_vm9, 1.0, %v1641_v13  ;;  %v1231_v40 = vsel %vm259_vm10, 1.0, %v1641_v13  ;;  %1514 = vmatprep.subr.bf16.mxu0 %v1497_v36  ;;  %1498 = vmatprep.subr.bf16.mxu1 %v1497_v36 }
  0xbd   :  { %1383 = vmatprep.mubr.msk.f32.mxu0 %vm304_vm0, %v1230_v39 }
  0xbe   :  { %1384 = vmatmul.mubr.msk.f32.gmra.mrb[4].mxu0 %vm304_vm0, %v1231_v40  ;;  %v241_v41 = vpop.permute.xlu0 %240  ;;  %v245_v42 = vpop.permute.xlu1 %244 }
  0xbf   :  { %vm266_vm11 = vcmp.eq.s32.totalorder %v241_v41, %v1726_v10  ;;  %vm267_vm12 = vcmp.eq.s32.totalorder %v245_v42, %v1726_v10  ;;  %1516 = vmatpush3.bf16.msra.mxu0 %v1497_v36  ;;  %1500 = vmatpush3.bf16.msra.mxu1 %v1497_v36 }
  0xc0   :  { %v1238_v43 = vsel %vm266_vm11, 1.0, %v1641_v13  ;;  %v1239_v44 = vsel %vm267_vm12, 1.0, %v1641_v13 }
  0xc1   :  { %1395 = vmatprep.mubr.msk.f32.mxu1 %vm304_vm0, %v1238_v43 }
  0xc2   :  { %1396 = vmatmul.mubr.msk.f32.gmra.mrb[4].mxu1 %vm304_vm0, %v1239_v44  ;;  %v217_v45 = vpop.permute.xlu0 %216  ;;  %v221_v46 = vpop.permute.xlu1 %220 }
  0xc3   :  { %vm260_vm13 = vcmp.eq.s32.totalorder %v217_v45, %v1726_v10  ;;  %vm261_vm14 = vcmp.eq.s32.totalorder %v221_v46, %v1726_v10 }
  0xc4   :  { %v1232_v47 = vsel %vm260_vm13, 1.0, %v1641_v13  ;;  %v1233_v48 = vsel %vm261_vm14, 1.0, %v1641_v13 }
  0xc5   :  { %1386 = vmatprep.mubr.msk.f32.mxu0 %vm304_vm0, %v1232_v47 }
  0xc6   :  { %1387 = vmatmul.mubr.msk.f32.gmra.mrb[6].mxu0 %vm304_vm0, %v1233_v48  ;;  %v249_v49 = vpop.permute.xlu0 %248  ;;  %v253_v50 = vpop.permute.xlu1 %252 }
  0xc7   :  { %vm268_vm15 = vcmp.eq.s32.totalorder %v249_v49, %v1726_v10  ;;  %vm269_vm1 = vcmp.eq.s32.totalorder %v253_v50, %v1726_v10 }
  0xc8   :  { %v1240_v51 = vsel %vm268_vm15, 1.0, %v1641_v13  ;;  %v1241_v52 = vsel %vm269_vm1, 1.0, %v1641_v13 }
  0xc9   :  { %1398 = vmatprep.mubr.msk.f32.mxu1 %vm304_vm0, %v1240_v51 }
  0xca   :  { %1399 = vmatmul.mubr.msk.f32.gmra.mrb[6].mxu1 %vm304_vm0, %v1241_v52  ;;  %v67_v53 = vpop.permute.xlu0 %66  ;;  %v71_v54 = vpop.permute.xlu1 %70 }
  0xcb   :  { %vm130_vm3 = vcmp.eq.s32.totalorder %v67_v53, %v1726_v10  ;;  %vm131_vm4 = vcmp.eq.s32.totalorder %v71_v54, %v1726_v10 }
  0xcc   :  { %v1209_v55 = vsel %vm130_vm3, 1.0, %v1641_v13  ;;  %v1210_v56 = vsel %vm131_vm4, 1.0, %v1641_v13 }
  0xcd   :  { %1457 = vmatprep.mubr.msk.f32.mxu0 %vm614_vm2, %v1209_v55 }
  0xce   :  { %1458 = vmatmul.mubr.msk.f32.vlgmr.msra.gmra.mrb[0].mxu0 %vm614_vm2, %v1210_v56  ;;  %v505_v57 = vpop.permute.xlu0 %504  ;;  %v509_v58 = vpop.permute.xlu1 %508 }
  0xcf   :  { %vm566_vm5 = vcmp.eq.s32.totalorder %v505_v57, %v1726_v10  ;;  %vm567_vm0 = vcmp.eq.s32.totalorder %v509_v58, %v1726_v10 }
  0xd0   :  { %v1259_v59 = vsel %vm566_vm5, 1.0, %v1641_v13  ;;  %v1260_v60 = vsel %vm567_vm0, 1.0, %v1641_v13 }
  0xd1   :  { %1417 = vmatprep.mubr.msk.f32.mxu1 %vm614_vm2, %v1259_v59 }
  0xd2   :  { %1418 = vmatmul.mubr.msk.f32.vlgmr.msra.gmra.mrb[8].mxu1 %vm614_vm2, %v1260_v60  ;;  %v75_v61 = vpop.permute.xlu0 %74  ;;  %v79_v62 = vpop.permute.xlu1 %78 }
  0xd3   :  { %vm132_vm6 = vcmp.eq.s32.totalorder %v75_v61, %v1726_v10  ;;  %vm133_vm7 = vcmp.eq.s32.totalorder %v79_v62, %v1726_v10 }
  0xd4   :  { %v1211_v63 = vsel %vm132_vm6, 1.0, %v1641_v13  ;;  %v1212_v0 = vsel %vm133_vm7, 1.0, %v1641_v13 }
  0xd5   :  { %1460 = vmatprep.mubr.msk.f32.mxu0 %vm614_vm2, %v1211_v63 }
  0xd6   :  { %1461 = vmatmul.mubr.msk.f32.gmra.mrb[2].mxu0 %vm614_vm2, %v1212_v0  ;;  %v513_v1 = vpop.permute.xlu0 %512  ;;  %v517_v2 = vpop.permute.xlu1 %516 }
  0xd7   :  { %vm568_vm8 = vcmp.eq.s32.totalorder %v513_v1, %v1726_v10  ;;  %vm569_vm9 = vcmp.eq.s32.totalorder %v517_v2, %v1726_v10 }
  0xd8   :  { %v1261_v3 = vsel %vm568_vm8, 1.0, %v1641_v13  ;;  %v1262_v4 = vsel %vm569_vm9, 1.0, %v1641_v13 }
  0xd9   :  { %1420 = vmatprep.mubr.msk.f32.mxu1 %vm614_vm2, %v1261_v3 }
  0xda   :  { %1421 = vmatmul.mubr.msk.f32.gmra.mrb[10].mxu1 %vm614_vm2, %v1262_v4  ;;  %v83_v5 = vpop.permute.xlu0 %82  ;;  %v87_v6 = vpop.permute.xlu1 %86 }
  0xdb   :  { %vm134_vm10 = vcmp.eq.s32.totalorder %v83_v5, %v1726_v10  ;;  %vm135_vm11 = vcmp.eq.s32.totalorder %v87_v6, %v1726_v10 }
  0xdc   :  { %v1213_v7 = vsel %vm134_vm10, 1.0, %v1641_v13  ;;  %v1214_v8 = vsel %vm135_vm11, 1.0, %v1641_v13 }
  0xdd   :  { %1463 = vmatprep.mubr.msk.f32.mxu0 %vm614_vm2, %v1213_v7 }
  0xde   :  { %1464 = vmatmul.mubr.msk.f32.gmra.mrb[4].mxu0 %vm614_vm2, %v1214_v8  ;;  %v521_v11 = vpop.permute.xlu0 %520  ;;  %v525_v12 = vpop.permute.xlu1 %524 }
  0xdf   :  { %vm570_vm12 = vcmp.eq.s32.totalorder %v521_v11, %v1726_v10  ;;  %vm571_vm13 = vcmp.eq.s32.totalorder %v525_v12, %v1726_v10 }
  0xe0   :  { %v1263_v14 = vsel %vm570_vm12, 1.0, %v1641_v13  ;;  %v1264_v15 = vsel %vm571_vm13, 1.0, %v1641_v13 }
  0xe1   :  { %1423 = vmatprep.mubr.msk.f32.mxu1 %vm614_vm2, %v1263_v14 }
  0xe2   :  { %1424 = vmatmul.mubr.msk.f32.gmra.mrb[12].mxu1 %vm614_vm2, %v1264_v15  ;;  %v91_v16 = vpop.permute.xlu0 %90  ;;  %v95_v17 = vpop.permute.xlu1 %94 }
  0xe3   :  { %vm136_vm14 = vcmp.eq.s32.totalorder %v91_v16, %v1726_v10  ;;  %vm137_vm15 = vcmp.eq.s32.totalorder %v95_v17, %v1726_v10 }
  0xe4   :  { %v1215_v18 = vsel %vm136_vm14, 1.0, %v1641_v13  ;;  %v1216_v19 = vsel %vm137_vm15, 1.0, %v1641_v13 }
  0xe5   :  { %1466 = vmatprep.mubr.msk.f32.mxu0 %vm614_vm2, %v1215_v18 }
  0xe6   :  { %1467 = vmatmul.mubr.msk.f32.gmra.mrb[6].mxu0 %vm614_vm2, %v1216_v19  ;;  %v529_v20 = vpop.permute.xlu0 %528  ;;  %v533_v21 = vpop.permute.xlu1 %532 }
  0xe7   :  { %vm572_vm1 = vcmp.eq.s32.totalorder %v529_v20, %v1726_v10  ;;  %vm573_vm3 = vcmp.eq.s32.totalorder %v533_v21, %v1726_v10 }
  0xe8   :  { %v1265_v22 = vsel %vm572_vm1, 1.0, %v1641_v13  ;;  %v1266_v23 = vsel %vm573_vm3, 1.0, %v1641_v13 }
  0xe9   :  { %1426 = vmatprep.mubr.msk.f32.mxu1 %vm614_vm2, %v1265_v22 }
  0xea   :  { %1427 = vmatmul.mubr.msk.f32.gmra.mrb[14].mxu1 %vm614_vm2, %v1266_v23  ;;  %v99_v24 = vpop.permute.xlu0 %98  ;;  %v103_v25 = vpop.permute.xlu1 %102 }
  0xeb   :  { %vm138_vm4 = vcmp.eq.s32.totalorder %v99_v24, %v1726_v10  ;;  %vm139_vm5 = vcmp.eq.s32.totalorder %v103_v25, %v1726_v10 }
  0xec   :  { %v1217_v26 = vsel %vm138_vm4, 1.0, %v1641_v13  ;;  %v1218_v27 = vsel %vm139_vm5, 1.0, %v1641_v13  ;;  %vm1097_vm5 = vcmask 195712  }
  0xed   :  { %1469 = vmatprep.mubr.msk.f32.mxu0 %vm614_vm2, %v1217_v26 }
  0xee   :  { %1470 = vmatmul.mubr.msk.f32.gmra.mrb[8].mxu0 %vm614_vm2, %v1218_v27  ;;  %v537_v28 = vpop.permute.xlu0 %536  ;;  %v541_v29 = vpop.permute.xlu1 %540 }
  0xef   :  { %vm574_vm0 = vcmp.eq.s32.totalorder %v537_v28, %v1726_v10  ;;  %vm575_vm6 = vcmp.eq.s32.totalorder %v541_v29, %v1726_v10 }
  0xf0   :  { %v1267_v30 = vsel %vm574_vm0, 1.0, %v1641_v13  ;;  %v1268_v31 = vsel %vm575_vm6, 1.0, %v1641_v13  ;;  %vm1104_vm0 = vcmask 261312   ;;  %vm1111_vm6 = vcmask 326912  }
  0xf1   :  { %1429 = vmatprep.mubr.msk.f32.mxu1 %vm614_vm2, %v1267_v30 }
  0xf2   :  { %1430 = vmatmul.mubr.msk.f32.gmra.mrb[16].mxu1 %vm614_vm2, %v1268_v31  ;;  %v107_v32 = vpop.permute.xlu0 %106  ;;  %v111_v33 = vpop.permute.xlu1 %110 }
  0xf3   :  { %vm140_vm7 = vcmp.eq.s32.totalorder %v107_v32, %v1726_v10  ;;  %vm141_vm8 = vcmp.eq.s32.totalorder %v111_v33, %v1726_v10 }
  0xf4   :  { %v1219_v34 = vsel %vm140_vm7, 1.0, %v1641_v13  ;;  %v1220_v35 = vsel %vm141_vm8, 1.0, %v1641_v13  ;;  %vm1118_vm7 = vcmask 392512   ;;  %vm1125_vm8 = vcmask 458112  }
  0xf5   :  { %1472 = vmatprep.mubr.msk.f32.mxu0 %vm614_vm2, %v1219_v34 }
  0xf6   :  { %1473 = vmatmul.mubr.msk.f32.gmra.mrb[10].mxu0 %vm614_vm2, %v1220_v35  ;;  %v545_v36 = vpop.permute.xlu0 %544  ;;  %v549_v37 = vpop.permute.xlu1 %548 }
  0xf7   :  { %vm576_vm9 = vcmp.eq.s32.totalorder %v545_v36, %v1726_v10  ;;  %vm577_vm10 = vcmp.eq.s32.totalorder %v549_v37, %v1726_v10 }
  0xf8   :  { %v1269_v38 = vsel %vm576_vm9, 1.0, %v1641_v13  ;;  %v1270_v39 = vsel %vm577_vm10, 1.0, %v1641_v13  ;;  %vm1132_vm9 = vcmask 523712   ;;  %vm1139_vm10 = vcmask 589312  }
  0xf9   :  { %1432 = vmatprep.mubr.msk.f32.mxu1 %vm614_vm2, %v1269_v38 }
  0xfa   :  { %1433 = vmatmul.mubr.msk.f32.gmra.mrb[18].mxu1 %vm614_vm2, %v1270_v39  ;;  %v115_v40 = vpop.permute.xlu0 %114  ;;  %v119_v41 = vpop.permute.xlu1 %118 }
  0xfb   :  { %vm142_vm11 = vcmp.eq.s32.totalorder %v115_v40, %v1726_v10  ;;  %vm143_vm12 = vcmp.eq.s32.totalorder %v119_v41, %v1726_v10 }
  0xfc   :  { %v1221_v42 = vsel %vm142_vm11, 1.0, %v1641_v13  ;;  %v1222_v43 = vsel %vm143_vm12, 1.0, %v1641_v13  ;;  %vm1146_vm11 = vcmask 654912   ;;  %vm1153_vm12 = vcmask 720512  }
  0xfd   :  { %1475 = vmatprep.mubr.msk.f32.mxu0 %vm614_vm2, %v1221_v42 }
  0xfe   :  { %1476 = vmatmul.mubr.msk.f32.gmra.mrb[12].mxu0 %vm614_vm2, %v1222_v43  ;;  %v553_v44 = vpop.permute.xlu0 %552  ;;  %v557_v45 = vpop.permute.xlu1 %556 }
  0xff   :  { %vm578_vm13 = vcmp.eq.s32.totalorder %v553_v44, %v1726_v10  ;;  %vm579_vm14 = vcmp.eq.s32.totalorder %v557_v45, %v1726_v10 }
 0x100   :  { %v1271_v46 = vsel %vm578_vm13, 1.0, %v1641_v13  ;;  %v1272_v47 = vsel %vm579_vm14, 1.0, %v1641_v13  ;;  %vm1160_vm13 = vcmask 786112   ;;  %vm1167_vm14 = vcmask 851712  }
 0x101   :  { %1435 = vmatprep.mubr.msk.f32.mxu1 %vm614_vm2, %v1271_v46 }
 0x102   :  { %1436 = vmatmul.mubr.msk.f32.gmra.mrb[20].mxu1 %vm614_vm2, %v1272_v47  ;;  %v123_v48 = vpop.permute.xlu0 %122  ;;  %v127_v49 = vpop.permute.xlu1 %126 }
 0x103   :  { %vm144_vm15 = vcmp.eq.s32.totalorder %v123_v48, %v1726_v10  ;;  %vm145_vm1 = vcmp.eq.s32.totalorder %v127_v49, %v1726_v10 }
 0x104   :  { %v1223_v50 = vsel %vm144_vm15, 1.0, %v1641_v13  ;;  %v1224_v51 = vsel %vm145_vm1, 1.0, %v1641_v13  ;;  %vm1174_vm15 = vcmask 917312   ;;  %vm1181_vm1 = vcmask 982912  }
 0x105   :  { %1478 = vmatprep.mubr.msk.f32.mxu0 %vm614_vm2, %v1223_v50 }
 0x106   :  { %1479 = vmatmul.mubr.msk.f32.gmra.mrb[14].mxu0 %vm614_vm2, %v1224_v51  ;;  %v561_v52 = vpop.permute.xlu0 %560  ;;  %v565_v53 = vpop.permute.xlu1 %564 }
 0x107   :  { %vm580_vm3 = vcmp.eq.s32.totalorder %v561_v52, %v1726_v10  ;;  %vm581_vm4 = vcmp.eq.s32.totalorder %v565_v53, %v1726_v10 }
 0x108   :  { %v1273_v54 = vsel %vm580_vm3, 1.0, %v1641_v13  ;;  %v1274_v55 = vsel %vm581_vm4, 1.0, %v1641_v13  ;;  %vm1188_vm3 = vcmask 1048512  }
 0x109   :  { %1438 = vmatprep.mubr.msk.f32.mxu1 %vm614_vm2, %v1273_v54 }
 0x10a   :  { %1439 = vmatmul.mubr.msk.f32.gmra.mrb[22].mxu1 %vm614_vm2, %v1274_v55  ;;  %vm1090_vm2 = vcmask 130112  }
 0x184   :  { %v1391_v56 = vpop.f32.mrb[0].mxu1 }
 0x185   :  { %v459_v57 = vpop.f32.mrb[1].mxu1 }
 0x18d   :  { %v1394_v58 = vpop.f32.mrb[2].mxu1 }
 0x18e   :  { %v469_v59 = vpop.f32.mrb[3].mxu1 }
 0x195   :  { %v1874_v60 = vpop.f32.mrb[4].mxu1 }
 0x196   :  { %v1876_v61 = vpop.f32.mrb[5].mxu1 }
 0x19d   :  { %v1878_v62 = vpop.f32.mrb[6].mxu1 }
 0x19e   :  { %v1880_v63 = vpop.f32.mrb[7].mxu1 }
 0x1a1   :  { %v1459_v0 = vpop.f32.mrb[0].mxu0 }
 0x1a2   :  { %v922_v1 = vpop.f32.mrb[1].mxu0 }
 0x1a5   :  { %v1419_v2 = vpop.f32.mrb[8].mxu1 }
 0x1a6   :  { %v1002_v13 = vsub.f32 %v1459_v0, %v1419_v2  ;;  %v729_v3 = vpop.f32.mrb[9].mxu1 }
 0x1a7   :  { %v1001_v4 = vsub.f32 %v922_v1, %v729_v3 }
 0x1a8   :  { %v1018_v5 = vand.u32 2147483647, %v1002_v13 }
 0x1a9   :  { %v1017_v6 = vand.u32 2147483647, %v1001_v4  ;;  %v1462_v7 = vpop.f32.mrb[2].mxu0 }
 0x1aa   :  { %1035 = vadd.xlane.f32.xlu1 %v1018_v5  ;;  %v932_v8 = vpop.f32.mrb[3].mxu0 }
 0x1ab   :  { %1033 = vadd.xlane.f32.xlu0 %v1017_v6 }
 0x1ad   :  { %v1422_v11 = vpop.f32.mrb[10].mxu1 }
 0x1ae   :  { %v1004_v12 = vsub.f32 %v1462_v7, %v1422_v11  ;;  %v739_v14 = vpop.f32.mrb[11].mxu1 }
 0x1af   :  { %v1003_v15 = vsub.f32 %v932_v8, %v739_v14 }
 0x1b0   :  { %v1020_v16 = vand.u32 2147483647, %v1004_v12 }
 0x1b1   :  { %v1465_v17 = vpop.f32.mrb[4].mxu0  ;;  %v1019_v19 = vand.u32 2147483647, %v1003_v15  ;;  %v1887_v15 = vshrl.u32 %v128_v9, 7 }
 0x1b2   :  { %1039 = vadd.xlane.f32.xlu0 %v1020_v16  ;;  %v942_v18 = vpop.f32.mrb[5].mxu0  ;;  %v1085_v16 = vadd.s32 4294967288, %v1726_v10 }
 0x1b5   :  { %v1425_v20 = vpop.f32.mrb[12].mxu1 }
 0x1b6   :  { %v1006_v21 = vsub.f32 %v1465_v17, %v1425_v20  ;;  %1037 = vadd.xlane.f32.xlu0 %v1019_v19  ;;  %v749_v22 = vpop.f32.mrb[13].mxu1  ;;  %v1092_v17 = vadd.s32 4294967280, %v1726_v10 }
 0x1b7   :  { %v1005_v23 = vsub.f32 %v942_v18, %v749_v22  ;;  %v1083_v18 = vsub.s32 %v1726_v10, %v1887_v15  ;;  %v1099_v22 = vadd.s32 4294967272, %v1726_v10 }
 0x1b8   :  { %v1022_v24 = vand.u32 2147483647, %v1006_v21  ;;  %v1095_v20 = vsub.s32 %v1092_v17, %v1887_v15  ;;  %v1106_v21 = vadd.s32 4294967264, %v1726_v10 }
 0x1b9   :  { %v1021_v25 = vand.u32 2147483647, %v1005_v23  ;;  %v1468_v26 = vpop.f32.mrb[6].mxu0 }
 0x1ba   :  { %1043 = vadd.xlane.f32.xlu0 %v1022_v24  ;;  %v952_v27 = vpop.f32.mrb[7].mxu0 }
 0x1bb   :  { %1041 = vadd.xlane.f32.xlu1 %v1021_v25 }
 0x1bd   :  { %v1428_v28 = vpop.f32.mrb[14].mxu1 }
 0x1be   :  { %v1008_v29 = vsub.f32 %v1468_v26, %v1428_v28  ;;  %v759_v30 = vpop.f32.mrb[15].mxu1  ;;  %v1109_v26 = vsub.s32 %v1106_v21, %v1887_v15  ;;  %v1102_v28 = vsub.s32 %v1099_v22, %v1887_v15 }
 0x1bf   :  { %v1007_v31 = vsub.f32 %v952_v27, %v759_v30  ;;  %v1120_v27 = vadd.s32 4294967248, %v1726_v10 }
 0x1c0   :  { %v1024_v32 = vand.u32 2147483647, %v1008_v29  ;;  %v1113_v29 = vadd.s32 4294967256, %v1726_v10 }
 0x1c1   :  { %v1023_v33 = vand.u32 2147483647, %v1007_v31  ;;  %v1471_v34 = vpop.f32.mrb[8].mxu0 }
 0x1c2   :  { %v968_v35 = vadd.f32 %v1471_v34, %v1391_v56  ;;  %1047 = vadd.xlane.f32.xlu0 %v1024_v32  ;;  %v962_v36 = vpop.f32.mrb[9].mxu0 }
 0x1c3   :  { %v963_v37 = vadd.f32 %v962_v36, %v459_v57  ;;  %1045 = vadd.xlane.f32.xlu1 %v1023_v33  ;;  %v1134_v36 = vadd.s32 4294967232, %v1726_v10 }
 0x1c5   :  { %v1431_v38 = vpop.f32.mrb[16].mxu1 }
 0x1c6   :  { %v1010_v39 = vsub.f32 %v968_v35, %v1431_v38  ;;  %v769_v40 = vpop.f32.mrb[17].mxu1  ;;  %v1123_v35 = vsub.s32 %v1120_v27, %v1887_v15  ;;  %v1116_v38 = vsub.s32 %v1113_v29, %v1887_v15 }
 0x1c7   :  { %v1009_v41 = vsub.f32 %v963_v37, %v769_v40 }
 0x1c8   :  { %v1026_v42 = vand.u32 2147483647, %v1010_v39  ;;  %v1127_v39 = vadd.s32 4294967240, %v1726_v10 }
 0x1c9   :  { %v1025_v43 = vand.u32 2147483647, %v1009_v41  ;;  %v1474_v44 = vpop.f32.mrb[10].mxu0 }
 0x1ca   :  { %v978_v45 = vadd.f32 %v1474_v44, %v1394_v58  ;;  %1051 = vadd.xlane.f32.xlu0 %v1026_v42  ;;  %v972_v46 = vpop.f32.mrb[11].mxu0 }
 0x1cb   :  { %v973_v47 = vadd.f32 %v972_v46, %v469_v59  ;;  %1049 = vadd.xlane.f32.xlu1 %v1025_v43  ;;  %v1148_v46 = vadd.s32 4294967216, %v1726_v10 }
 0x1cd   :  { %v1434_v48 = vpop.f32.mrb[18].mxu1 }
 0x1ce   :  { %v1012_v49 = vsub.f32 %v978_v45, %v1434_v48  ;;  %v779_v50 = vpop.f32.mrb[19].mxu1  ;;  %v1137_v45 = vsub.s32 %v1134_v36, %v1887_v15  ;;  %v1130_v48 = vsub.s32 %v1127_v39, %v1887_v15 }
 0x1cf   :  { %v1011_v51 = vsub.f32 %v973_v47, %v779_v50 }
 0x1d0   :  { %v1028_v52 = vand.u32 2147483647, %v1012_v49  ;;  %v1141_v49 = vadd.s32 4294967224, %v1726_v10 }
 0x1d1   :  { %v1027_v53 = vand.u32 2147483647, %v1011_v51  ;;  %v1477_v54 = vpop.f32.mrb[12].mxu0 }
 0x1d2   :  { %v988_v55 = vadd.f32 %v1477_v54, %v1874_v60  ;;  %1055 = vadd.xlane.f32.xlu0 %v1028_v52  ;;  %v982_v56 = vpop.f32.mrb[13].mxu0 }
 0x1d3   :  { %v983_v57 = vadd.f32 %v982_v56, %v1876_v61  ;;  %1053 = vadd.xlane.f32.xlu1 %v1027_v53  ;;  %v1162_v56 = vadd.s32 4294967200, %v1726_v10 }
 0x1d5   :  { %v1437_v0 = vpop.f32.mrb[20].mxu1 }
 0x1d6   :  { %v1014_v58 = vsub.f32 %v988_v55, %v1437_v0  ;;  %v789_v1 = vpop.f32.mrb[21].mxu1  ;;  %v1151_v55 = vsub.s32 %v1148_v46, %v1887_v15  ;;  %v1144_v0 = vsub.s32 %v1141_v49, %v1887_v15 }
 0x1d7   :  { %v1013_v2 = vsub.f32 %v983_v57, %v789_v1 }
 0x1d8   :  { %v1030_v59 = vand.u32 2147483647, %v1014_v58  ;;  %v1155_v58 = vadd.s32 4294967208, %v1726_v10 }
 0x1d9   :  { %v1029_v13 = vand.u32 2147483647, %v1013_v2  ;;  %v1480_v3 = vpop.f32.mrb[14].mxu0 }
 0x1da   :  { %v998_v4 = vadd.f32 %v1480_v3, %v1878_v62  ;;  %1059 = vadd.xlane.f32.xlu0 %v1030_v59  ;;  %v992_v5 = vpop.f32.mrb[15].mxu0 }
 0x1db   :  { %v993_v6 = vadd.f32 %v992_v5, %v1880_v63  ;;  %1057 = vadd.xlane.f32.xlu1 %v1029_v13  ;;  %v1088_v63 = vsub.s32 %v1085_v16, %v1887_v15 }
 0x1dd   :  { %v1440_v60 = vpop.f32.mrb[22].mxu1 }
 0x1de   :  { %v1016_v7 = vsub.f32 %v998_v4, %v1440_v60  ;;  %v799_v8 = vpop.f32.mrb[23].mxu1  ;;  %v1165_v4 = vsub.s32 %v1162_v56, %v1887_v15  ;;  %v1169_v60 = vadd.s32 4294967192, %v1726_v10 }
 0x1df   :  { %v1015_v11 = vsub.f32 %v993_v6, %v799_v8  ;;  %v1158_v6 = vsub.s32 %v1155_v58, %v1887_v15  ;;  %v1176_v8 = vadd.s32 4294967184, %v1726_v10 }
 0x1e0   :  { %v1032_v61 = vand.u32 2147483647, %v1016_v7  ;;  %v1172_v17 = vsub.s32 %v1169_v60, %v1887_v15 }
 0x1e1   :  { %v1031_v12 = vand.u32 2147483647, %v1015_v11 }
 0x1e2   :  { %1063 = vadd.xlane.f32.xlu0 %v1032_v61  ;;  %v1183_v61 = vadd.s32 4294967176, %v1726_v10 }
 0x1e3   :  { %1061 = vadd.xlane.f32.xlu1 %v1031_v12 }
 0x237   :  { %v1036_v19 = vpop.xlane.xlu1 %1035 }
 0x238   :  { %v1034_v14 = vpop.xlane.xlu0 %1033  ;;  %v1089_v9 = vrot.slane %v1036_v19, %v1088_v63  ;;  %v1179_v63 = vsub.s32 %v1176_v8, %v1887_v15  ;;  %v1186_v19 = vsub.s32 %v1183_v61, %v1887_v15 }
 0x239   :  { %v1084_v24 = vrot.slane %v1034_v14, %v1083_v18 }
 0x23b   :  { %v1091_v31 = vsel %vm1090_vm2, %v1089_v9, %v1084_v24 }
 0x23f   :  { %v1040_v62 = vpop.xlane.xlu0 %1039 }
 0x240   :  { %v1103_v37 = vrot.slane %v1040_v62, %v1102_v28 }
 0x243   :  { %v1038_v23 = vpop.xlane.xlu0 %1037 }
 0x244   :  { %v1096_v25 = vrot.slane %v1038_v23, %v1095_v20 }
 0x246   :  { %v1098_v32 = vsel %vm1097_vm5, %v1096_v25, %v1091_v31 }
 0x247   :  { %v1044_v33 = vpop.xlane.xlu0 %1043  ;;  %v1105_v41 = vsel %vm1104_vm0, %v1103_v37, %v1098_v32 }
 0x248   :  { %v1042_v30 = vpop.xlane.xlu1 %1041  ;;  %v1117_v47 = vrot.slane %v1044_v33, %v1116_v38 }
 0x249   :  { %v1110_v34 = vrot.slane %v1042_v30, %v1109_v26 }
 0x24b   :  { %v1112_v42 = vsel %vm1111_vm6, %v1110_v34, %v1105_v41 }
 0x24c   :  { %v1119_v51 = vsel %vm1118_vm7, %v1117_v47, %v1112_v42 }
 0x24f   :  { %v1048_v43 = vpop.xlane.xlu0 %1047 }
 0x250   :  { %v1046_v40 = vpop.xlane.xlu1 %1045  ;;  %v1131_v57 = vrot.slane %v1048_v43, %v1130_v48 }
 0x251   :  { %v1124_v44 = vrot.slane %v1046_v40, %v1123_v35 }
 0x253   :  { %v1126_v52 = vsel %vm1125_vm8, %v1124_v44, %v1119_v51 }
 0x254   :  { %v1133_v2 = vsel %vm1132_vm9, %v1131_v57, %v1126_v52 }
 0x257   :  { %v1052_v53 = vpop.xlane.xlu0 %1051 }
 0x258   :  { %v1050_v50 = vpop.xlane.xlu1 %1049  ;;  %v1145_v5 = vrot.slane %v1052_v53, %v1144_v0 }
 0x259   :  { %v1138_v54 = vrot.slane %v1050_v50, %v1137_v45 }
 0x25b   :  { %v1140_v59 = vsel %vm1139_vm10, %v1138_v54, %v1133_v2 }
 0x25c   :  { %v1147_v11 = vsel %vm1146_vm11, %v1145_v5, %v1140_v59 }
 0x25f   :  { %v1056_v13 = vpop.xlane.xlu0 %1055 }
 0x260   :  { %v1054_v1 = vpop.xlane.xlu1 %1053  ;;  %v1159_v62 = vrot.slane %v1056_v13, %v1158_v6 }
 0x261   :  { %v1152_v3 = vrot.slane %v1054_v1, %v1151_v55 }
 0x263   :  { %v1154_v12 = vsel %vm1153_vm12, %v1152_v3, %v1147_v11 }
 0x264   :  { %v1161_v18 = vsel %vm1160_vm13, %v1159_v62, %v1154_v12 }
 0x267   :  { %v1060_v14 = vpop.xlane.xlu0 %1059 }
 0x268   :  { %v1058_v7 = vpop.xlane.xlu1 %1057  ;;  %v1173_v22 = vrot.slane %v1060_v14, %v1172_v17 }
 0x269   :  { %v1166_v16 = vrot.slane %v1058_v7, %v1165_v4 }
 0x26b   :  { %v1168_v20 = vsel %vm1167_vm14, %v1166_v16, %v1161_v18 }
 0x26c   :  { %v1175_v24 = vsel %vm1174_vm15, %v1173_v22, %v1168_v20 }
 0x26f   :  { %v1064_v21 = vpop.xlane.xlu0 %1063 }
 0x270   :  { %v1062_v23 = vpop.xlane.xlu1 %1061  ;;  %v1187_v9 = vrot.slane %v1064_v21, %v1186_v19 }
 0x271   :  { %v1180_v10 = vrot.slane %v1062_v23, %v1179_v63 }
 0x273   :  { %v1182_v25 = vsel %vm1181_vm1, %v1180_v10, %v1175_v24 }
 0x274   :  { %v1189_v26 = vsel %vm1188_vm3, %v1187_v9, %v1182_v25 }
 0x275   :  { %1191 = vst [vmem:[#allocation8] sm:$0x1] %v1189_v26 }
 0x276   :  { %1619 = shalt.err (!%p1616_p0)
}
 0x277   :  { %s1620_s12 = scalar_lea.hbm %s1938_s5, 16 }
 0x278   :  { %p1621_p1 = scmp.ne.s32.totalorder %s1938_s5, %s1620_s12  ;;  %p1624_p2 = scmp.lt.u32.totalorder %s1620_s12, %s1938_s5 }
 0x27a   :  { %p1626_p3 = pnand %p1624_p2, %p1621_p1 }
 0x27c   :  { %1629 = shalt.err (!%p1626_p3)
}
 0x27d   :  { %1201 = dma.vmem_to_hbm [thread:$0]  %s1199_s28, 16, %s1938_s5, [#allocation4]  }
 0x27e   :  { %1634 = dma.done.wait [#allocation4], 16  }
 0x27f   :  { %1635 = vsyncadd [#allocation4], 4294967280 }
 0x280   :  { %1205 = vsyncpa [#allocation3], 1 }
 0x281   :  { %1206 = vsyncpa [#allocation6], 1 }
 0x282   :  { %1207 = vsyncpa [#allocation4], 1 }

</bundles_post_ra>
